<compile_context>
chip_gen: v6e
topology: v6e:2x2x1
jax: 0.10.0
libtpu: 0.0.40
codegen_flags: <defaults>
</compile_context>

<pallas_src>
import functools

import jax
import jax.numpy as jnp
from jax.experimental import pallas as pl
from jax.experimental.pallas import tpu as pltpu


def _linear_block_kernel(x_ref, w0_ref, b0_ref, w1_ref, b1_ref, w2_ref, b2_ref,
                         o_ref):
    """Fused relu(relu(relu(x@W0+b0)@W1+b1)@W2+b2) for one batch tile."""
    h = jnp.dot(x_ref[...], w0_ref[...], preferred_element_type=jnp.float32)
    h = jnp.maximum(h + b0_ref[...], 0.0)

    # Cast activations back to the weight dtype between layers (no-op for f32;
    # for bf16 weights this keeps the MXU fast path while accumulation stays
    # f32 via preferred_element_type).
    h = jnp.dot(h.astype(w1_ref.dtype), w1_ref[...],
                preferred_element_type=jnp.float32)
    h = jnp.maximum(h + b1_ref[...], 0.0)

    h = jnp.dot(h.astype(w2_ref.dtype), w2_ref[...],
                preferred_element_type=jnp.float32)
    h = jnp.maximum(h + b2_ref[...], 0.0)

    o_ref[...] = h.astype(o_ref.dtype)


def _block_diag_repeat(w, pack):
    """block_diag(w, ..., w) with `pack` copies == kron(I_pack, w)."""
    if pack == 1:
        return w
    return jnp.kron(jnp.eye(pack, dtype=w.dtype), w)


@functools.partial(jax.jit, static_argnames=("block_m",))
def linear_block(x, w0, b0, w1, b1, w2, b2, *, block_m=512):
    """Pallas implementation of LinearBlock.forward (n_linears=3).

    x:  (M, in_channels)
    w0: (in_channels, out_channels),  b0: (1, out_channels) or (out_channels,)
    w1, w2: (out_channels, out_channels), b1, b2: like b0
    returns (M, out_channels), dtype of x.
    """
    M, Cin = x.shape
    Cout = w0.shape[1]

    # ---- lane packing: make the minor (lane) dim a multiple of 128 ----------
    pack = 128 // Cout if (Cout < 128 and 128 % Cout == 0) else 1

    itemsize = jnp.dtype(x.dtype).itemsize
    sublane = max(8, 32 // max(itemsize, 1))      # 8 for f32, 16 for bf16
    unit = sublane * pack                         # batch rows per sublane tile

    # ---- batch tiling --------------------------------------------------------
    row_tile = max(unit, (min(block_m, max(M, unit)) // unit) * unit)
    m_pad = pl.cdiv(M, row_tile) * row_tile
    # Prefer >= 2 grid steps so v7x's two TensorCores both get batch tiles
    # (measured near-zero impact on single-TC v5e/v6e).
    if m_pad == row_tile and row_tile % (2 * unit) == 0:
        row_tile //= 2

    if m_pad != M:
        x = jnp.pad(x, ((0, m_pad - M), (0, 0)))

    # Packed views / parameters (all free or tiny, done outside the kernel).
    kin = pack * Cin
    kh = pack * Cout
    bm_p = row_tile // pack                       # packed rows per grid step
    x_p = x.reshape(m_pad // pack, kin)
    w0_p = _block_diag_repeat(w0, pack)
    w1_p = _block_diag_repeat(w1, pack)
    w2_p = _block_diag_repeat(w2, pack)
    b0_p = jnp.tile(b0.reshape(1, -1).astype(jnp.float32), (1, pack))
    b1_p = jnp.tile(b1.reshape(1, -1).astype(jnp.float32), (1, pack))
    b2_p = jnp.tile(b2.reshape(1, -1).astype(jnp.float32), (1, pack))

    grid = (m_pad // row_tile,)

    in_specs = [
        pl.BlockSpec((bm_p, kin), lambda i: (i, 0)),   # x tile (walks batch)
        pl.BlockSpec((kin, kh), lambda i: (0, 0)),     # W0 (resident)
        pl.BlockSpec((1, kh), lambda i: (0, 0)),       # b0 (f32)
        pl.BlockSpec((kh, kh), lambda i: (0, 0)),      # W1
        pl.BlockSpec((1, kh), lambda i: (0, 0)),       # b1
        pl.BlockSpec((kh, kh), lambda i: (0, 0)),      # W2
        pl.BlockSpec((1, kh), lambda i: (0, 0)),       # b2
    ]
    out_specs = pl.BlockSpec((bm_p, kh), lambda i: (i, 0))

    # VMEM budget: double-buffered x/out tiles + resident weights/biases +
    # f32 intermediates, with headroom.  Weight specs have constant index_maps
    # so they are only DMA'd on the first grid step; for very large Cout,
    # consider pipeline_mode=pl.Buffered(1) on them or tiling K/N instead.
    wgt_bytes = (kin * kh + 2 * kh * kh) * jnp.dtype(w0.dtype).itemsize
    blk_bytes = (2 * bm_p * kin * itemsize            # x tile (double buffer)
                 + 2 * bm_p * kh * itemsize           # out tile (double buffer)
                 + 2 * wgt_bytes + 2 * 3 * kh * 4     # weights + f32 biases
                 + 3 * bm_p * kh * 4)                 # f32 intermediates
    vmem_limit = int(min(64 * 2**20, max(32 * 2**20, 2 * blk_bytes)))

    cost = pl.CostEstimate(
        flops=2 * M * Cout * (Cin + 2 * Cout),
        transcendentals=0,
        bytes_accessed=int(M * (Cin + Cout) * itemsize
                           + (Cin * Cout + 2 * Cout * Cout + 3 * Cout) * 4),
    )

    out_p = pl.pallas_call(
        _linear_block_kernel,
        out_shape=jax.ShapeDtypeStruct((m_pad // pack, kh), x.dtype),
        grid=grid,
        in_specs=in_specs,
        out_specs=out_specs,
        compiler_params=pltpu.CompilerParams(
            dimension_semantics=("parallel",),
            vmem_limit_bytes=vmem_limit),
        cost_estimate=cost,
    )(x_p, w0_p, b0_p, w1_p, b1_p, w2_p, b2_p)

    # Undo lane packing (free row-major reshape) and drop batch padding.
    return out_p.reshape(m_pad, Cout)[:M]


def init_linear_block_params(key, in_channels, out_channels, n_linears=3,
                             dtype=jnp.float32):
    """Deterministic synthetic init mimicking nn.Linear (uniform +/- 1/sqrt(fan_in))."""
    params = []
    fan_ins = [in_channels] + [out_channels] * (n_linears - 1)
    for fan_in in fan_ins:
        key, kw, kb = jax.random.split(key, 3)
        bound = 1.0 / jnp.sqrt(fan_in)
        # stored as (in, out) == W_pytorch.T
        w = jax.random.uniform(kw, (fan_in, out_channels), dtype,
                               minval=-bound, maxval=bound)
        b = jax.random.uniform(kb, (1, out_channels), dtype,
                               minval=-bound, maxval=bound)
        params += [w, b]
    return params


def _reference(x, w0, b0, w1, b1, w2, b2):
    hp = jax.lax.Precision.HIGHEST
    h = jax.nn.relu(jnp.dot(x, w0, precision=hp) + b0)
    h = jax.nn.relu(jnp.dot(h, w1, precision=hp) + b1)
    h = jax.nn.relu(jnp.dot(h, w2, precision=hp) + b2)
    return h


if __name__ == "__main__":
    key = jax.random.PRNGKey(0)
    batch, in_channels, out_channels = 8, 16, 32

    key, kx = jax.random.split(key)
    x = jax.random.normal(kx, (batch, in_channels), jnp.float32)
    params = init_linear_block_params(key, in_channels, out_channels,
                                      n_linears=3)

    out = linear_block(x, *params)
    out = jax.block_until_ready(out)

    ref = _reference(x, *params)
    assert out.shape == (batch, out_channels)
    assert jnp.allclose(out, ref, atol=1e-5, rtol=1e-5), "mismatch vs reference"

    print("KERNEL_OK")
</pallas_src>

<mosaic_0001>
module attributes {stable_mosaic.version = 11 : i64} {
  func.func @_linear_block_kernel(%arg0: i32, %arg1: memref<8x64xf32, #tpu.memory_space<vmem>>, %arg2: memref<64x128xf32, #tpu.memory_space<vmem>>, %arg3: memref<1x128xf32, #tpu.memory_space<vmem>>, %arg4: memref<128x128xf32, #tpu.memory_space<vmem>>, %arg5: memref<1x128xf32, #tpu.memory_space<vmem>>, %arg6: memref<128x128xf32, #tpu.memory_space<vmem>>, %arg7: memref<1x128xf32, #tpu.memory_space<vmem>>, %arg8: memref<8x128xf32, #tpu.memory_space<vmem>>) attributes {dimension_semantics = [#tpu.dimension_semantics<parallel>], iteration_bounds = array<i64: 1>, scalar_prefetch = 0 : i64, scratch_operands = 0 : i64, tpu.core_type = #tpu.core_type<tc>, window_params = [{transform_indices = @transform_0, window_bounds = array<i64: 8, 64>}, {pipeline_mode = #tpu.pipeline_mode<synchronous>, transform_indices = @transform_1, window_bounds = array<i64: 64, 128>}, {pipeline_mode = #tpu.pipeline_mode<synchronous>, transform_indices = @transform_2, window_bounds = array<i64: 1, 128>}, {pipeline_mode = #tpu.pipeline_mode<synchronous>, transform_indices = @transform_3, window_bounds = array<i64: 128, 128>}, {pipeline_mode = #tpu.pipeline_mode<synchronous>, transform_indices = @transform_4, window_bounds = array<i64: 1, 128>}, {pipeline_mode = #tpu.pipeline_mode<synchronous>, transform_indices = @transform_5, window_bounds = array<i64: 128, 128>}, {pipeline_mode = #tpu.pipeline_mode<synchronous>, transform_indices = @transform_6, window_bounds = array<i64: 1, 128>}, {transform_indices = @transform_7, window_bounds = array<i64: 8, 128>}]} {
    %c0 = arith.constant 0 : index
    %c0_0 = arith.constant 0 : index
    %0 = vector.load %arg1[%c0, %c0_0] : memref<8x64xf32, #tpu.memory_space<vmem>>, vector<8x64xf32>
    %c0_1 = arith.constant 0 : index
    %c0_2 = arith.constant 0 : index
    %1 = vector.load %arg2[%c0_1, %c0_2] : memref<64x128xf32, #tpu.memory_space<vmem>>, vector<64x128xf32>
    %cst = arith.constant dense<0.000000e+00> : vector<8x128xf32>
    %2 = tpu.matmul %0, %1, %cst {dimension_numbers = #tpu.dot_dimension_numbers<[1], [0], [0], [1], [0, 0, 1, 1], [], []>} : vector<8x64xf32>, vector<64x128xf32>, vector<8x128xf32> -> vector<8x128xf32>
    %c0_3 = arith.constant 0 : index
    %c0_4 = arith.constant 0 : index
    %3 = vector.load %arg3[%c0_3, %c0_4] : memref<1x128xf32, #tpu.memory_space<vmem>>, vector<1x128xf32>
    %4 = vector.broadcast %3 : vector<1x128xf32> to vector<8x128xf32>
    %5 = arith.addf %2, %4 : vector<8x128xf32>
    %cst_5 = arith.constant 0.000000e+00 : f32
    %6 = vector.broadcast %cst_5 : f32 to vector<8x128xf32>
    %7 = arith.maximumf %5, %6 : vector<8x128xf32>
    %c0_6 = arith.constant 0 : index
    %c0_7 = arith.constant 0 : index
    %8 = vector.load %arg4[%c0_6, %c0_7] : memref<128x128xf32, #tpu.memory_space<vmem>>, vector<128x128xf32>
    %cst_8 = arith.constant dense<0.000000e+00> : vector<8x128xf32>
    %9 = tpu.matmul %7, %8, %cst_8 {dimension_numbers = #tpu.dot_dimension_numbers<[1], [0], [0], [1], [0, 0, 1, 1], [], []>} : vector<8x128xf32>, vector<128x128xf32>, vector<8x128xf32> -> vector<8x128xf32>
    %c0_9 = arith.constant 0 : index
    %c0_10 = arith.constant 0 : index
    %10 = vector.load %arg5[%c0_9, %c0_10] : memref<1x128xf32, #tpu.memory_space<vmem>>, vector<1x128xf32>
    %11 = vector.broadcast %10 : vector<1x128xf32> to vector<8x128xf32>
    %12 = arith.addf %9, %11 : vector<8x128xf32>
    %cst_11 = arith.constant 0.000000e+00 : f32
    %13 = vector.broadcast %cst_11 : f32 to vector<8x128xf32>
    %14 = arith.maximumf %12, %13 : vector<8x128xf32>
    %c0_12 = arith.constant 0 : index
    %c0_13 = arith.constant 0 : index
    %15 = vector.load %arg6[%c0_12, %c0_13] : memref<128x128xf32, #tpu.memory_space<vmem>>, vector<128x128xf32>
    %cst_14 = arith.constant dense<0.000000e+00> : vector<8x128xf32>
    %16 = tpu.matmul %14, %15, %cst_14 {dimension_numbers = #tpu.dot_dimension_numbers<[1], [0], [0], [1], [0, 0, 1, 1], [], []>} : vector<8x128xf32>, vector<128x128xf32>, vector<8x128xf32> -> vector<8x128xf32>
    %c0_15 = arith.constant 0 : index
    %c0_16 = arith.constant 0 : index
    %17 = vector.load %arg7[%c0_15, %c0_16] : memref<1x128xf32, #tpu.memory_space<vmem>>, vector<1x128xf32>
    %18 = vector.broadcast %17 : vector<1x128xf32> to vector<8x128xf32>
    %19 = arith.addf %16, %18 : vector<8x128xf32>
    %cst_17 = arith.constant 0.000000e+00 : f32
    %20 = vector.broadcast %cst_17 : f32 to vector<8x128xf32>
    %21 = arith.maximumf %19, %20 : vector<8x128xf32>
    %c0_18 = arith.constant 0 : index
    %c0_19 = arith.constant 0 : index
    %22 = vector.load %arg8[%c0_18, %c0_19] : memref<8x128xf32, #tpu.memory_space<vmem>>, vector<8x128xf32>
    tpu.vector_store %arg8[%c0_18, %c0_19], %21 {strides = array<i32>} : memref<8x128xf32, #tpu.memory_space<vmem>>, vector<8x128xf32>,
    return
  }
  func.func @transform_0(%arg0: i32) -> (i32, i32) {
    %c0_i32 = arith.constant 0 : i32
    %c0_i32_0 = arith.constant 0 : i32
    return %arg0, %c0_i32 : i32, i32
  }
  func.func @transform_1(%arg0: i32) -> (i32, i32) {
    %c0_i32 = arith.constant 0 : i32
    %c0_i32_0 = arith.constant 0 : i32
    %c0_i32_1 = arith.constant 0 : i32
    return %c0_i32, %c0_i32_0 : i32, i32
  }
  func.func @transform_2(%arg0: i32) -> (i32, i32) {
    %c0_i32 = arith.constant 0 : i32
    %c0_i32_0 = arith.constant 0 : i32
    %c0_i32_1 = arith.constant 0 : i32
    return %c0_i32, %c0_i32_0 : i32, i32
  }
  func.func @transform_3(%arg0: i32) -> (i32, i32) {
    %c0_i32 = arith.constant 0 : i32
    %c0_i32_0 = arith.constant 0 : i32
    %c0_i32_1 = arith.constant 0 : i32
    return %c0_i32, %c0_i32_0 : i32, i32
  }
  func.func @transform_4(%arg0: i32) -> (i32, i32) {
    %c0_i32 = arith.constant 0 : i32
    %c0_i32_0 = arith.constant 0 : i32
    %c0_i32_1 = arith.constant 0 : i32
    return %c0_i32, %c0_i32_0 : i32, i32
  }
  func.func @transform_5(%arg0: i32) -> (i32, i32) {
    %c0_i32 = arith.constant 0 : i32
    %c0_i32_0 = arith.constant 0 : i32
    %c0_i32_1 = arith.constant 0 : i32
    return %c0_i32, %c0_i32_0 : i32, i32
  }
  func.func @transform_6(%arg0: i32) -> (i32, i32) {
    %c0_i32 = arith.constant 0 : i32
    %c0_i32_0 = arith.constant 0 : i32
    %c0_i32_1 = arith.constant 0 : i32
    return %c0_i32, %c0_i32_0 : i32, i32
  }
  func.func @transform_7(%arg0: i32) -> (i32, i32) {
    %c0_i32 = arith.constant 0 : i32
    %c0_i32_0 = arith.constant 0 : i32
    return %arg0, %c0_i32 : i32, i32
  }
}

</mosaic_0001>

<bundles_post_ra>
// kernel: linear_block.1
= control target key start
LH: loop header
LB: loop body
LE: loop exit
PB: predicated region body
PF: predicated region fallthrough
CT: control target
= control target key end

     0   :  { %v448_v0 = vmov 0.0   ;;  %vm449_vm0 = vmmov 0   ;;  %vm42_vm1 = vcmask 523264   ;;  %s671_s1 = inlined_call_operand.vmem [shape: f32[64,128], index: 1, kind: input, shape index: {}]   ;;  %s672_s3 = inlined_call_operand.vmem [shape: f32[128,128], index: 3, kind: input, shape index: {}]   ;;  %s673_s0 = inlined_call_operand.vmem [shape: f32[8,64], index: 0, kind: input, shape index: {}]   ;;  %s674_s5 = inlined_call_operand.vmem [shape: f32[128,128], index: 5, kind: input, shape index: {}]   ;;  %s675_s2 = inlined_call_operand.vmem [shape: f32[1,128], index: 2, kind: input, shape index: {}]   ;;  %s676_s4 = inlined_call_operand.vmem [shape: f32[1,128], index: 4, kind: input, shape index: {}]   ;;  %s677_s6 = inlined_call_operand.vmem [shape: f32[1,128], index: 6, kind: input, shape index: {}]   ;;  %s678_s7 = inlined_call_operand.vmem [shape: f32[8,128], index: 7, kind: output, shape index: {}]  }
   0x1   :  { %357 = vmatprep.subr.mxu0 %v448_v0  ;;  %v34_v1 = vld [vmem:[%s671_s1 + $0x38] sm:$0xff]  ;;  %v33_v2 = vld [vmem:[%s671_s1 + $0x30] sm:$0xff]  ;;  %373 = vmatprep.mubr.msk.f32.mxu0 %vm449_vm0, %v448_v0  ;;  %v32_v3 = vld [vmem:[%s671_s1 + $0x28] sm:$0xff] }
   0x2   :  { %358 = vmatpush3.msra.mxu0 %v34_v1  ;;  %376 = vmatprep.subr.mxu1 %v448_v0  ;;  %v132_v4 = vld [vmem:[%s672_s3 + $0x78] sm:$0xff]  ;;  %v131_v5 = vld [vmem:[%s672_s3 + $0x70] sm:$0xff]  ;;  %v31_v6 = vld [vmem:[%s671_s1 + $0x20] sm:$0xff] }
   0x3   :  { %359 = vmatprep.subr.mxu0 %v448_v0  ;;  %408 = vmatprep.mubr.msk.f32.mxu1 %vm449_vm0, %v448_v0  ;;  %v130_v7 = vld [vmem:[%s672_s3 + $0x68] sm:$0xff]  ;;  %v30_v8 = vld [vmem:[%s671_s1 + $0x18] sm:$0xff]  ;;  %v129_v9 = vld [vmem:[%s672_s3 + $0x60] sm:$0xff] }
   0x4   :  { %360 = vmatpush3.msra.mxu0 %v33_v2  ;;  %377 = vmatpush3.msra.mxu1 %v132_v4  ;;  %v29_v10 = vld [vmem:[%s671_s1 + $0x10] sm:$0xff]  ;;  %v128_v11 = vld [vmem:[%s672_s3 + $0x58] sm:$0xff]  ;;  %v28_v12 = vld [vmem:[%s671_s1 + $0x8] sm:$0xff] }
   0x5   :  { %361 = vmatprep.subr.mxu0 %v448_v0  ;;  %378 = vmatprep.subr.mxu1 %v448_v0  ;;  %v127_v13 = vld [vmem:[%s672_s3 + $0x50] sm:$0xff]  ;;  %v27_v14 = vld [vmem:[%s671_s1] sm:$0xff]  ;;  %v126_v16 = vld [vmem:[%s672_s3 + $0x48] sm:$0xff] }
   0x6   :  { %362 = vmatpush3.msra.mxu0 %v32_v3  ;;  %379 = vmatpush3.msra.mxu1 %v131_v5  ;;  %v26_v15 = vld [vmem:[%s673_s0] sm:$0xff]  ;;  %v124_v18 = vld [vmem:[%s672_s3 + $0x38] sm:$0xff]  ;;  %v123_v19 = vld [vmem:[%s672_s3 + $0x30] sm:$0xff] }
   0x7   :  { %363 = vmatprep.subr.mxu0 %v448_v0  ;;  %380 = vmatprep.subr.mxu1 %v448_v0  ;;  %v125_v17 = vld [vmem:[%s672_s3 + $0x40] sm:$0xff]  ;;  %v122_v20 = vld [vmem:[%s672_s3 + $0x28] sm:$0xff]  ;;  %v120_v22 = vld [vmem:[%s672_s3 + $0x18] sm:$0xff] }
   0x8   :  { %364 = vmatpush3.msra.mxu0 %v31_v6  ;;  %381 = vmatpush3.msra.mxu1 %v130_v7  ;;  %v121_v21 = vld [vmem:[%s672_s3 + $0x20] sm:$0xff]  ;;  %v119_v23 = vld [vmem:[%s672_s3 + $0x10] sm:$0xff]  ;;  %v118_v24 = vld [vmem:[%s672_s3 + $0x8] sm:$0xff] }
   0x9   :  { %365 = vmatprep.subr.mxu0 %v448_v0  ;;  %382 = vmatprep.subr.mxu1 %v448_v0  ;;  %v117_v25 = vld [vmem:[%s672_s3] sm:$0xff]  ;;  %v226_v26 = vld [vmem:[%s674_s5 + $0x78] sm:$0xff]  ;;  %v225_v27 = vld [vmem:[%s674_s5 + $0x70] sm:$0xff] }
   0xa   :  { %366 = vmatpush3.msra.mxu0 %v30_v8  ;;  %383 = vmatpush3.msra.mxu1 %v129_v9  ;;  %v224_v28 = vld [vmem:[%s674_s5 + $0x68] sm:$0xff]  ;;  %v223_v29 = vld [vmem:[%s674_s5 + $0x60] sm:$0xff]  ;;  %v222_v30 = vld [vmem:[%s674_s5 + $0x58] sm:$0xff] }
   0xb   :  { %367 = vmatprep.subr.mxu0 %v448_v0  ;;  %384 = vmatprep.subr.mxu1 %v448_v0  ;;  %v221_v31 = vld [vmem:[%s674_s5 + $0x50] sm:$0xff]  ;;  %v220_v32 = vld [vmem:[%s674_s5 + $0x48] sm:$0xff]  ;;  %v219_v33 = vld [vmem:[%s674_s5 + $0x40] sm:$0xff] }
   0xc   :  { %368 = vmatpush3.msra.mxu0 %v29_v10  ;;  %385 = vmatpush3.msra.mxu1 %v128_v11  ;;  %v218_v34 = vld [vmem:[%s674_s5 + $0x38] sm:$0xff]  ;;  %v217_v35 = vld [vmem:[%s674_s5 + $0x30] sm:$0xff]  ;;  %v216_v36 = vld [vmem:[%s674_s5 + $0x28] sm:$0xff] }
   0xd   :  { %369 = vmatprep.subr.mxu0 %v448_v0  ;;  %386 = vmatprep.subr.mxu1 %v448_v0  ;;  %v215_v37 = vld [vmem:[%s674_s5 + $0x20] sm:$0xff]  ;;  %v214_v38 = vld [vmem:[%s674_s5 + $0x18] sm:$0xff]  ;;  %v213_v44 = vld [vmem:[%s674_s5 + $0x10] sm:$0xff] }
   0xe   :  { %370 = vmatpush3.msra.mxu0 %v28_v12  ;;  %387 = vmatpush3.msra.mxu1 %v127_v13  ;;  %v310_v39 = vld [vmem:[%s675_s2] ss:$0 sm:$0xff]  ;;  %v212_v45 = vld [vmem:[%s674_s5 + $0x8] sm:$0xff] }
   0xf   :  { %371 = vmatprep.subr.mxu0 %v448_v0  ;;  %388 = vmatprep.subr.mxu1 %v448_v0  ;;  %v211_v46 = vld [vmem:[%s674_s5] sm:$0xff] }
  0x10   :  { %372 = vmatpush3.msra.mxu0 %v27_v14  ;;  %389 = vmatpush3.msra.mxu1 %v126_v16  ;;  %v312_v47 = vld [vmem:[%s676_s4] ss:$0 sm:$0xff] }
  0x11   :  { %374 = vmatmul.mubr.msk.f32.vlgmr.msra.gmra.mxu0 %vm42_vm1, %v26_v15  ;;  %390 = vmatprep.subr.mxu1 %v448_v0  ;;  %v313_v52 = vld [vmem:[%s677_s6] ss:$0 sm:$0xff] }
  0x12   :  { %411 = vmatprep.subr.mxu0 %v448_v0  ;;  %391 = vmatpush3.msra.mxu1 %v125_v17 }
  0x13   :  { %443 = vmatprep.mubr.msk.f32.mxu0 %vm449_vm0, %v448_v0  ;;  %392 = vmatprep.subr.mxu1 %v448_v0 }
  0x14   :  { %393 = vmatpush3.msra.mxu1 %v124_v18  ;;  %412 = vmatpush3.msra.mxu0 %v226_v26 }
  0x15   :  { %394 = vmatprep.subr.mxu1 %v448_v0  ;;  %413 = vmatprep.subr.mxu0 %v448_v0 }
  0x16   :  { %395 = vmatpush3.msra.mxu1 %v123_v19  ;;  %414 = vmatpush3.msra.mxu0 %v225_v27 }
  0x17   :  { %396 = vmatprep.subr.mxu1 %v448_v0  ;;  %415 = vmatprep.subr.mxu0 %v448_v0 }
  0x18   :  { %397 = vmatpush3.msra.mxu1 %v122_v20  ;;  %416 = vmatpush3.msra.mxu0 %v224_v28 }
  0x19   :  { %398 = vmatprep.subr.mxu1 %v448_v0  ;;  %417 = vmatprep.subr.mxu0 %v448_v0 }
  0x1a   :  { %399 = vmatpush3.msra.mxu1 %v121_v21  ;;  %418 = vmatpush3.msra.mxu0 %v223_v29 }
  0x1b   :  { %400 = vmatprep.subr.mxu1 %v448_v0  ;;  %419 = vmatprep.subr.mxu0 %v448_v0 }
  0x1c   :  { %401 = vmatpush3.msra.mxu1 %v120_v22  ;;  %420 = vmatpush3.msra.mxu0 %v222_v30 }
  0x1d   :  { %402 = vmatprep.subr.mxu1 %v448_v0  ;;  %421 = vmatprep.subr.mxu0 %v448_v0 }
  0x1e   :  { %403 = vmatpush3.msra.mxu1 %v119_v23  ;;  %422 = vmatpush3.msra.mxu0 %v221_v31 }
  0x1f   :  { %404 = vmatprep.subr.mxu1 %v448_v0  ;;  %423 = vmatprep.subr.mxu0 %v448_v0 }
  0x20   :  { %405 = vmatpush3.msra.mxu1 %v118_v24  ;;  %424 = vmatpush3.msra.mxu0 %v220_v32 }
  0x21   :  { %406 = vmatprep.subr.mxu1 %v448_v0  ;;  %425 = vmatprep.subr.mxu0 %v448_v0 }
  0x22   :  { %407 = vmatpush3.msra.mxu1 %v117_v25  ;;  %426 = vmatpush3.msra.mxu0 %v219_v33 }
  0x23   :  { %427 = vmatprep.subr.mxu0 %v448_v0 }
  0x24   :  { %428 = vmatpush3.msra.mxu0 %v218_v34 }
  0x25   :  { %429 = vmatprep.subr.mxu0 %v448_v0 }
  0x26   :  { %430 = vmatpush3.msra.mxu0 %v217_v35 }
  0x27   :  { %431 = vmatprep.subr.mxu0 %v448_v0 }
  0x28   :  { %432 = vmatpush3.msra.mxu0 %v216_v36 }
  0x29   :  { %433 = vmatprep.subr.mxu0 %v448_v0 }
  0x2a   :  { %434 = vmatpush3.msra.mxu0 %v215_v37 }
  0x2b   :  { %435 = vmatprep.subr.mxu0 %v448_v0 }
  0x2c   :  { %436 = vmatpush3.msra.mxu0 %v214_v38 }
  0x2d   :  { %437 = vmatprep.subr.mxu0 %v448_v0 }
  0x2e   :  { %438 = vmatpush3.msra.mxu0 %v213_v44 }
  0x2f   :  { %439 = vmatprep.subr.mxu0 %v448_v0 }
  0x30   :  { %440 = vmatpush3.msra.mxu0 %v212_v45 }
  0x31   :  { %441 = vmatprep.subr.mxu0 %v448_v0 }
  0x32   :  { %442 = vmatpush3.msra.mxu0 %v211_v46 }
  0xd1   :  { %v112_v40 = vpop.f32.mrf.mxu0 }
  0xd2   :  { %v113_v41 = vadd.f32 %v310_v39, %v112_v40 }
  0xd3   :  { %v375_v42 = vpop.f32.mrf.mxu0 }
  0xd4   :  { %v116_v43 = vmax.f32 %v113_v41, 0.0 }
  0xd6   :  { %409 = vmatmul.mubr.f32.vlgmr.msra.gmra.mxu1 %v116_v43 }
 0x196   :  { %v206_v48 = vpop.f32.mrf.mxu1 }
 0x197   :  { %v207_v49 = vadd.f32 %v312_v47, %v206_v48 }
 0x198   :  { %v410_v50 = vpop.f32.mrf.mxu1 }
 0x199   :  { %v210_v51 = vmax.f32 %v207_v49, 0.0 }
 0x19b   :  { %444 = vmatmul.mubr.f32.vlgmr.msra.gmra.mxu0 %v210_v51 }
 0x25b   :  { %v300_v53 = vpop.f32.mrf.mxu0 }
 0x25c   :  { %v301_v54 = vadd.f32 %v313_v52, %v300_v53 }
 0x25d   :  { %v445_v55 = vpop.f32.mrf.mxu0 }
 0x25e   :  { %v304_v56 = vmax.f32 %v301_v54, 0.0 }
 0x260   :  { %305 = vst [vmem:[%s678_s7] sm:$0xff] %v304_v56 }

</bundles_post_ra>
